<compile_context>
chip_gen: v5e
topology: v5e:2x2
jax: 0.10.0
libtpu: 0.0.40
codegen_flags: <defaults>
</compile_context>

<pallas_src>
import math
import functools

import jax
import jax.numpy as jnp
from jax.experimental import pallas as pl
from jax.experimental.pallas import tpu as pltpu


# ---------------------------------------------------------------------------
# Kernels (operate on lane-dense [ts, B*D] tiles).
# ---------------------------------------------------------------------------

def _posenc_add_kernel(x_ref, pe_ref, o_ref):
    # Same-shape elementwise add: no in-kernel broadcast, full-lane stores.
    o_ref[...] = x_ref[...] + pe_ref[...]


def _posenc_dropout_kernel(x_ref, pe_ref, bits_ref, o_ref, *, threshold, scale):
    # keep iff uniform uint32 < (1 - p) * 2^32  — pure integer compare on VPU.
    y = x_ref[...] + pe_ref[...]
    keep = bits_ref[...] < jnp.uint32(threshold)
    s = jnp.asarray(scale, dtype=y.dtype)          # scale in y.dtype (no f32 promo)
    o_ref[...] = jnp.where(keep, y * s, jnp.zeros_like(y))


# ---------------------------------------------------------------------------
# Positional-encoding table (matches the PyTorch __init__).
# ---------------------------------------------------------------------------

def make_positional_encoding_table(d_model: int, max_len: int = 100000,
                                   dtype=jnp.float32):
    position = jnp.arange(max_len, dtype=jnp.float32)[:, None]           # (L, 1)
    div_term = jnp.exp(jnp.arange(0, d_model, 2, dtype=jnp.float32)
                       * (-math.log(10000.0) / d_model))                 # (D/2,)
    pe = jnp.zeros((max_len, d_model), dtype=jnp.float32)
    pe = pe.at[:, 0::2].set(jnp.sin(position * div_term))
    pe = pe.at[:, 1::2].set(jnp.cos(position * div_term))
    return pe.astype(dtype)


# ---------------------------------------------------------------------------
# Wrapper.
# ---------------------------------------------------------------------------

def _pick_seq_tile(S: int, row_bytes: int, target_bytes: int = 2 << 20) -> int:
    """Largest seq tile that divides S, is a multiple of 8 (sublane), and keeps
    one x/out tile at ~target_bytes. Falls back to the full S."""
    target_rows = max(1, target_bytes // max(row_bytes, 1))
    best = None
    ts = 8
    limit = min(S, target_rows)
    while ts <= limit:
        if S % ts == 0:
            best = ts
        ts += 8
    return best if best is not None else S


def positional_encoding(x, pe, *, dropout_p: float = 0.1,
                        training: bool = False, rng_key=None,
                        seq_tile: int | None = None):
    """x: [S, B, D]; pe: [max_len, D]. Returns x + pe[:S] (dropout if training)."""
    S, B, D = x.shape
    C = B * D

    # Lane-dense presentation: [S, B, D] -> [S, B*D] is a free contiguous view
    # for the seq-first layout; pe is sliced, cast and broadcast over batch once
    # in the wrapper so the kernel sees two identically shaped operands.
    x_flat = x.reshape(S, C)
    pe_s = jax.lax.slice(pe, (0, 0), (S, D)).astype(x.dtype)
    pe_flat = jnp.tile(pe_s, (1, B))                                     # (S, B*D)

    row_bytes = C * x.dtype.itemsize
    ts = _pick_seq_tile(S, row_bytes) if seq_tile is None else seq_tile
    assert S % ts == 0, "seq_tile must divide seq_len"
    grid = (S // ts,)

    spec = pl.BlockSpec((ts, C), lambda i: (i, 0))
    cparams = pltpu.CompilerParams(
        # Independent tiles, no accumulator -> shard across both TCs on v7x.
        dimension_semantics=("parallel",),
        # 2 MiB tiles * 2 buffers * (3 or 4 streams) stays well inside this on
        # v5e / v6e / v7x physical VMEM.
        vmem_limit_bytes=32 * 1024 * 1024,
    )

    if not training or dropout_p == 0.0:
        out = pl.pallas_call(
            _posenc_add_kernel,
            out_shape=jax.ShapeDtypeStruct((S, C), x.dtype),
            grid_spec=pltpu.PrefetchScalarGridSpec(
                num_scalar_prefetch=0, grid=grid,
                in_specs=[spec, spec], out_specs=spec),
            compiler_params=cparams,
        )(x_flat, pe_flat)
        return out.reshape(S, B, D)

    # Training: dropout. Random bits come from jax.random in the wrapper so the
    # kernel lowers everywhere (TPU and interpret); the mask is also independent
    # of the tiling, so it is reproducible across seq_tile choices.
    # TODO(synk): on real TPU the extra uint32 read stream could be removed by
    # using the in-kernel hardware PRNG (pltpu.prng_seed / prng_random_bits).
    if rng_key is None:
        rng_key = jax.random.PRNGKey(0)
    bits = jax.random.bits(rng_key, (S, C), dtype=jnp.uint32)

    p = float(dropout_p)
    threshold = min(int(round((1.0 - p) * 4294967296.0)), 4294967295)
    kern = functools.partial(_posenc_dropout_kernel,
                             threshold=threshold, scale=1.0 / (1.0 - p))
    out = pl.pallas_call(
        kern,
        out_shape=jax.ShapeDtypeStruct((S, C), x.dtype),
        grid_spec=pltpu.PrefetchScalarGridSpec(
            num_scalar_prefetch=0, grid=grid,
            in_specs=[spec, spec, spec], out_specs=spec),
        compiler_params=cparams,
    )(x_flat, pe_flat, bits)
    return out.reshape(S, B, D)


# ---------------------------------------------------------------------------
# Demo / self-check.
# ---------------------------------------------------------------------------

if __name__ == "__main__":
    # x = [seq_len, batch, d_model], same convention as the PyTorch module.
    S, B, D = 8, 2, 32
    MAX_LEN = 128  # small table for the demo (module default 100000)

    key = jax.random.PRNGKey(0)
    kx, kd = jax.random.split(key)
    x = jax.random.normal(kx, (S, B, D), dtype=jnp.float32)
    pe = make_positional_encoding_table(D, max_len=MAX_LEN)

    # Eval mode (dropout disabled): deterministic check vs pure-JAX reference.
    out = positional_encoding(x, pe, dropout_p=0.1, training=False)
    out = jax.block_until_ready(out)
    ref = x + pe[:S][:, None, :]
    assert out.shape == (S, B, D)
    assert jnp.allclose(out, ref, atol=1e-6), "eval mismatch vs reference"

    # Training mode: every element must be 0 (dropped) or ref / (1 - p) (kept).
    p = 0.1
    out_tr = positional_encoding(x, pe, dropout_p=p, training=True, rng_key=kd)
    out_tr = jax.block_until_ready(out_tr)
    scaled = ref / (1.0 - p)
    ok = jnp.all((out_tr == 0) | jnp.isclose(out_tr, scaled, atol=1e-5))
    assert bool(ok), "train-mode dropout mismatch"

    print("KERNEL_OK")
</pallas_src>

<mosaic_0001>
module attributes {stable_mosaic.version = 11 : i64} {
  func.func @_posenc_add_kernel(%arg0: i32, %arg1: memref<8x64xf32, #tpu.memory_space<vmem>>, %arg2: memref<8x64xf32, #tpu.memory_space<vmem>>, %arg3: memref<8x64xf32, #tpu.memory_space<vmem>>) attributes {dimension_semantics = [#tpu.dimension_semantics<parallel>], iteration_bounds = array<i64: 1>, scalar_prefetch = 0 : i64, scratch_operands = 0 : i64, tpu.core_type = #tpu.core_type<tc>, window_params = [{transform_indices = @transform_0, window_bounds = array<i64: 8, 64>}, {transform_indices = @transform_1, window_bounds = array<i64: 8, 64>}, {transform_indices = @transform_2, window_bounds = array<i64: 8, 64>}]} {
    %c0 = arith.constant 0 : index
    %c0_0 = arith.constant 0 : index
    %0 = vector.load %arg1[%c0, %c0_0] : memref<8x64xf32, #tpu.memory_space<vmem>>, vector<8x64xf32>
    %c0_1 = arith.constant 0 : index
    %c0_2 = arith.constant 0 : index
    %1 = vector.load %arg2[%c0_1, %c0_2] : memref<8x64xf32, #tpu.memory_space<vmem>>, vector<8x64xf32>
    %2 = arith.addf %0, %1 : vector<8x64xf32>
    %c0_3 = arith.constant 0 : index
    %c0_4 = arith.constant 0 : index
    %3 = vector.load %arg3[%c0_3, %c0_4] : memref<8x64xf32, #tpu.memory_space<vmem>>, vector<8x64xf32>
    tpu.vector_store %arg3[%c0_3, %c0_4], %2 {strides = array<i32>} : memref<8x64xf32, #tpu.memory_space<vmem>>, vector<8x64xf32>,
    return
  }
  func.func @transform_0(%arg0: i32) -> (i32, i32) {
    %c0_i32 = arith.constant 0 : i32
    %c0_i32_0 = arith.constant 0 : i32
    return %arg0, %c0_i32 : i32, i32
  }
  func.func @transform_1(%arg0: i32) -> (i32, i32) {
    %c0_i32 = arith.constant 0 : i32
    %c0_i32_0 = arith.constant 0 : i32
    return %arg0, %c0_i32 : i32, i32
  }
  func.func @transform_2(%arg0: i32) -> (i32, i32) {
    %c0_i32 = arith.constant 0 : i32
    %c0_i32_0 = arith.constant 0 : i32
    return %arg0, %c0_i32 : i32, i32
  }
}

</mosaic_0001>

<bundles_post_ra>
// kernel: tpu_custom_call.1
= control target key start
LH: loop header
LB: loop body
LE: loop exit
PB: predicated region body
PF: predicated region fallthrough
CT: control target
= control target key end

     0   :  { %7 = vsyncpa [#allocation3], 0  ;;  %s171_s0 = inlined_call_operand.hbm [shape: f32[8,64], index: 0, kind: input, shape index: {}]   ;;  %s172_s1 = inlined_call_operand.hbm [shape: f32[8,64], index: 1, kind: input, shape index: {}]   ;;  %s173_s2 = inlined_call_operand.hbm [shape: f32[8,64], index: 2, kind: output, shape index: {}]  }
   0x1   :  { %8 = vsyncpa [#allocation6], 0 }
   0x2   :  { %9 = vsyncpa [#allocation4], 0  ;;  %s15_s11 = sshll.u32 %s171_s0, 4  ;;  %s144_s12 = smov [#allocation2]   ;;  %s16_s11 = int_to_ptr.hbm [resolvable:$true] %s15_s11 }
   0x3   :  { %s17_s13 = sshll.u32 %s144_s12, 4  ;;  %s26_s16 = sshll.u32 %s172_s1, 4  ;;  %s18_s13 = int_to_ptr.vmem [resolvable:$true] %s17_s13  ;;  %s27_s16 = int_to_ptr.hbm [resolvable:$true] %s26_s16 }
   0x4   :  { %20 = dma.hbm_to_vmem [thread:$0]  %s16_s11, 128, %s18_s13, [#allocation3]  }
   0x5   :  { %s145_s17 = smov [#allocation5]  }
   0x6   :  { %s28_s18 = sshll.u32 %s145_s17, 4  ;;  %s29_s18 = int_to_ptr.vmem [resolvable:$true] %s28_s18 }
   0x7   :  { %31 = dma.hbm_to_vmem [thread:$0]  %s27_s16, 128, %s29_s18, [#allocation6]  }
   0x8   :  { %138 = dma.done.wait [#allocation3], 128  }
   0x9   :  { %139 = vsyncadd [#allocation3], 4294967168 }
   0xa   :  { %140 = dma.done.wait [#allocation6], 128  }
   0xb   :  { %141 = vsyncadd [#allocation6], 4294967168  ;;  %s146_s19 = smov [#allocation7]   ;;  %s52_s22 = sshll.u32 %s173_s2, 4  ;;  %v40_v0 = vld [vmem:[#allocation2] sm:$0xff]  ;;  %v41_v1 = vld [vmem:[#allocation5] sm:$0xff]  ;;  %s53_s22 = int_to_ptr.hbm [resolvable:$true] %s52_s22 }
   0xc   :  { %s50_s0 = sshll.u32 %s146_s19, 4  ;;  %vm43_vm0 = vcmask 523264   ;;  %v42_v2 = vadd.f32 %v41_v1, %v40_v0  ;;  %s51_s0 = int_to_ptr.vmem [resolvable:$true] %s50_s0 }
   0xe   :  { %44 = vst.msk [vmem:[#allocation7] sm:$0xff] %vm43_vm0, %v42_v2 }
   0xf   :  { %55 = dma.vmem_to_hbm [thread:$0]  %s51_s0, 128, %s53_s22, [#allocation4]  }
  0x10   :  { %142 = dma.done.wait [#allocation4], 128  }
  0x11   :  { %143 = vsyncadd [#allocation4], 4294967168 }
  0x12   :  { %60 = vsyncpa [#allocation3], 1 }
  0x13   :  { %61 = vsyncpa [#allocation6], 1 }
  0x14   :  { %62 = vsyncpa [#allocation4], 1 }

</bundles_post_ra>
